<compile_context>
chip_gen: v5e
topology: v5e:2x2
jax: 0.10.0
libtpu: 0.0.40
codegen_flags: <defaults>
</compile_context>

<pallas_src>
import jax
import jax.numpy as jnp
from jax.experimental import pallas as pl
from jax.experimental.pallas import tpu as pltpu


def _round_up(x, m):
    return ((x + m - 1) // m) * m


def _decoder_output_kernel(x_ref, w_ref, b_ref, o_ref, m_ref, l_ref):
    # x_ref: (tm, dmodel) bf16   (resident per row tile)
    # w_ref: (dmodel, tv) bf16   (streamed per vocab tile / pass)
    # b_ref: (1, tv)      f32
    # o_ref: (tm, tv)     f32
    # m_ref/l_ref: (tm, 1) f32 scratch (running max / running sum)
    p = pl.program_id(1)   # 0 = stats pass, 1 = normalize/store pass
    j = pl.program_id(2)   # vocab tile

    # bf16 x bf16 -> f32 accumulate on the MXU; bias add + softmax in f32.
    logits = jnp.dot(
        x_ref[...], w_ref[...], preferred_element_type=jnp.float32
    ) + b_ref[...]

    @pl.when(jnp.logical_and(p == 0, j == 0))
    def _():
        m_ref[...] = jnp.full_like(m_ref, -jnp.inf)
        l_ref[...] = jnp.zeros_like(l_ref)

    @pl.when(p == 0)
    def _():
        m_prev = m_ref[...]
        m_new = jnp.maximum(m_prev, jnp.max(logits, axis=-1, keepdims=True))
        l_ref[...] = l_ref[...] * jnp.exp(m_prev - m_new) + jnp.sum(
            jnp.exp(logits - m_new), axis=-1, keepdims=True
        )
        m_ref[...] = m_new

    @pl.when(p == 1)
    def _():
        e = jnp.exp(logits - m_ref[...])
        o_ref[...] = (e * pl.reciprocal(l_ref[...], approx=True)).astype(o_ref.dtype)


def decoder_output_generator(
    x, w_t, b, *, tm_target=256, tv_target=512, vmem_limit_bytes=48 * 1024 * 1024
):
    """softmax(x @ w_t + b, axis=-1).

    x   : (batch, seq, dmodel)  float
    w_t : (dmodel, vocab)       float  -- pre-transposed nn.Linear.weight
                                          (store it this way once at load time)
    b   : (vocab,)              float
    returns (batch, seq, vocab) float32
    """
    batch, seq, dmodel = x.shape
    vocab = w_t.shape[1]
    M = batch * seq

    # Row (sublane) tile: biggest of tm_target that is still useful; pad rows.
    tm = min(tm_target, _round_up(M, 8))
    Mp = _round_up(M, tm)

    # Vocab (lane) tile: multiple of 128; pad vocab columns.
    tv = min(tv_target, _round_up(vocab, 128))
    Vp = _round_up(vocab, tv)

    x2d = x.reshape(M, dmodel)
    if Mp != M:
        x2d = jnp.pad(x2d, ((0, Mp - M), (0, 0)))
    if Vp != vocab:
        w_t = jnp.pad(w_t, ((0, 0), (0, Vp - vocab)))
        # Padded vocab columns get a huge negative logit -> ~0 probability.
        b = jnp.pad(b, (0, Vp - vocab), constant_values=-1e30)

    # bf16 operands for the MXU (halves weight/activation DMA); softmax stays f32.
    x2d = x2d.astype(jnp.bfloat16)
    w2d = w_t.astype(jnp.bfloat16)
    b2d = b.reshape(1, Vp).astype(jnp.float32)

    grid = (Mp // tm, 2, Vp // tv)

    # TODO(synk): for a real LM head, fuse the downstream consumer (log-softmax /
    # top-k / sampling) or emit bf16 probabilities to avoid writing the full
    # (M, vocab) f32 probability matrix to HBM.
    out2d = pl.pallas_call(
        _decoder_output_kernel,
        out_shape=jax.ShapeDtypeStruct((Mp, Vp), jnp.float32),
        grid_spec=pltpu.PrefetchScalarGridSpec(
            num_scalar_prefetch=0,
            grid=grid,
            in_specs=[
                # x row tile: constant in (p, j) -> stays resident per row tile.
                pl.BlockSpec((tm, dmodel), lambda i, p, j: (i, 0)),
                # weight / bias vocab tile: streamed per (pass, vocab tile).
                pl.BlockSpec((dmodel, tv), lambda i, p, j: (0, j)),
                pl.BlockSpec((1, tv), lambda i, p, j: (0, j)),
            ],
            # Output block written only in pass 1; during pass 0 the index stays
            # (i, 0) so nothing is flushed before it is fully written
            # (same pattern as flash-attention's last-kv-step store).
            out_specs=pl.BlockSpec((tm, tv), lambda i, p, j: (i, j * p)),
            scratch_shapes=[
                pltpu.VMEM((tm, 1), jnp.float32),  # running max
                pltpu.VMEM((tm, 1), jnp.float32),  # running sum
            ],
        ),
        compiler_params=pltpu.CompilerParams(
            dimension_semantics=("parallel", "arbitrary", "arbitrary"),
            vmem_limit_bytes=vmem_limit_bytes,
        ),
    )(x2d, w2d, b2d)

    return out2d[:M, :vocab].reshape(batch, seq, vocab)


if __name__ == "__main__":
    # small shapes consistent with the module's forward
    batch, seq, dmodel, vocab_size = 2, 8, 32, 128

    key = jax.random.PRNGKey(0)
    kx, kw, kb = jax.random.split(key, 3)

    x = jax.random.normal(kx, (batch, seq, dmodel), dtype=jnp.float32)

    # deterministic parameter init (mimics nn.Linear uniform(-1/sqrt(dmodel), 1/sqrt(dmodel)))
    bound = 1.0 / (dmodel ** 0.5)
    w = jax.random.uniform(kw, (vocab_size, dmodel), jnp.float32, -bound, bound)  # PyTorch layout
    b = jax.random.uniform(kb, (vocab_size,), jnp.float32, -bound, bound)
    w_t = w.T  # pre-transposed once (a real model should store the weight this way)

    out = decoder_output_generator(x, w_t, b)
    out = jax.block_until_ready(out)

    # reference check in plain JAX (f32); bf16 matmul + approx reciprocal need a
    # looser tolerance than the original f32-only kernel.
    ref = jax.nn.softmax(x @ w_t + b, axis=-1)
    assert out.shape == (batch, seq, vocab_size)
    assert jnp.allclose(out, ref, atol=2e-2, rtol=2e-2), float(jnp.max(jnp.abs(out - ref)))
    assert jnp.allclose(jnp.sum(out, axis=-1), 1.0, atol=5e-3)

    print("KERNEL_OK")
</pallas_src>

<mosaic_0001>
module attributes {stable_mosaic.version = 11 : i64} {
  func.func @_decoder_output_kernel(%arg0: i32, %arg1: i32, %arg2: i32, %arg3: memref<16x32xbf16, #tpu.memory_space<vmem>>, %arg4: memref<32x128xbf16, #tpu.memory_space<vmem>>, %arg5: memref<1x128xf32, #tpu.memory_space<vmem>>, %arg6: memref<16x128xf32, #tpu.memory_space<vmem>>, %arg7: memref<16x1xf32, #tpu.memory_space<vmem>>, %arg8: memref<16x1xf32, #tpu.memory_space<vmem>>) attributes {dimension_semantics = [#tpu.dimension_semantics<parallel>, #tpu.dimension_semantics<arbitrary>, #tpu.dimension_semantics<arbitrary>], iteration_bounds = array<i64: 1, 2, 1>, scalar_prefetch = 0 : i64, scratch_operands = 2 : i64, tpu.core_type = #tpu.core_type<tc>, window_params = [{transform_indices = @transform_0, window_bounds = array<i64: 16, 32>}, {transform_indices = @transform_1, window_bounds = array<i64: 32, 128>}, {transform_indices = @transform_2, window_bounds = array<i64: 1, 128>}, {transform_indices = @transform_3, window_bounds = array<i64: 16, 128>}]} {
    %c0 = arith.constant 0 : index
    %c0_0 = arith.constant 0 : index
    %0 = vector.load %arg3[%c0, %c0_0] : memref<16x32xbf16, #tpu.memory_space<vmem>>, vector<16x32xbf16>
    %c0_1 = arith.constant 0 : index
    %c0_2 = arith.constant 0 : index
    %1 = vector.load %arg4[%c0_1, %c0_2] : memref<32x128xbf16, #tpu.memory_space<vmem>>, vector<32x128xbf16>
    %cst = arith.constant dense<0.000000e+00> : vector<16x128xf32>
    %2 = tpu.matmul %0, %1, %cst {dimension_numbers = #tpu.dot_dimension_numbers<[1], [0], [0], [1], [0, 0, 1, 1], [], []>} : vector<16x32xbf16>, vector<32x128xbf16>, vector<16x128xf32> -> vector<16x128xf32>
    %c0_3 = arith.constant 0 : index
    %c0_4 = arith.constant 0 : index
    %3 = vector.load %arg5[%c0_3, %c0_4] : memref<1x128xf32, #tpu.memory_space<vmem>>, vector<1x128xf32>
    %4 = vector.broadcast %3 : vector<1x128xf32> to vector<16x128xf32>
    %5 = arith.addf %2, %4 : vector<16x128xf32>
    %c0_i32 = arith.constant 0 : i32
    %6 = arith.cmpi eq, %arg1, %c0_i32 : i32
    %c0_i32_5 = arith.constant 0 : i32
    %7 = arith.cmpi eq, %arg2, %c0_i32_5 : i32
    %8 = arith.andi %6, %7 : i1
    %9 = arith.extui %8 : i1 to i32
    %c0_i32_6 = arith.constant 0 : i32
    %10 = arith.cmpi ne, %9, %c0_i32_6 : i32
    scf.if %10 {
      %cst_10 = arith.constant 0xFF800000 : f32
      %17 = vector.broadcast %cst_10 : f32 to vector<16x1xf32>
      %c0_11 = arith.constant 0 : index
      %c0_12 = arith.constant 0 : index
      %18 = vector.load %arg7[%c0_11, %c0_12] : memref<16x1xf32, #tpu.memory_space<vmem>>, vector<16x1xf32>
      tpu.vector_store %arg7[%c0_11, %c0_12], %17 {strides = array<i32>} : memref<16x1xf32, #tpu.memory_space<vmem>>, vector<16x1xf32>,
      %cst_13 = arith.constant 0.000000e+00 : f32
      %19 = vector.broadcast %cst_13 : f32 to vector<16x1xf32>
      %c0_14 = arith.constant 0 : index
      %c0_15 = arith.constant 0 : index
      %20 = vector.load %arg8[%c0_14, %c0_15] : memref<16x1xf32, #tpu.memory_space<vmem>>, vector<16x1xf32>
      tpu.vector_store %arg8[%c0_14, %c0_15], %19 {strides = array<i32>} : memref<16x1xf32, #tpu.memory_space<vmem>>, vector<16x1xf32>,
    } else {
    }
    %c0_i32_7 = arith.constant 0 : i32
    %11 = arith.cmpi eq, %arg1, %c0_i32_7 : i32
    %12 = arith.extui %11 : i1 to i32
    %c0_i32_8 = arith.constant 0 : i32
    %13 = arith.cmpi ne, %12, %c0_i32_8 : i32
    scf.if %13 {
      %c0_10 = arith.constant 0 : index
      %c0_11 = arith.constant 0 : index
      %17 = vector.load %arg7[%c0_10, %c0_11] : memref<16x1xf32, #tpu.memory_space<vmem>>, vector<16x1xf32>
      %cst_12 = arith.constant dense<0xFF800000> : vector<16xf32>
      %18 = vector.multi_reduction <maximumf>, %5, %cst_12 [1] : vector<16x128xf32> to vector<16xf32>
      %19 = vector.shape_cast %18 : vector<16xf32> to vector<16x1xf32>
      %20 = arith.maximumf %17, %19 : vector<16x1xf32>
      %c0_13 = arith.constant 0 : index
      %c0_14 = arith.constant 0 : index
      %21 = vector.load %arg8[%c0_13, %c0_14] : memref<16x1xf32, #tpu.memory_space<vmem>>, vector<16x1xf32>
      %22 = arith.subf %17, %20 : vector<16x1xf32>
      %23 = math.exp %22 : vector<16x1xf32>
      %24 = arith.mulf %21, %23 : vector<16x1xf32>
      %25 = vector.broadcast %20 : vector<16x1xf32> to vector<16x128xf32>
      %26 = arith.subf %5, %25 : vector<16x128xf32>
      %27 = math.exp %26 : vector<16x128xf32>
      %cst_15 = arith.constant dense<0.000000e+00> : vector<16xf32>
      %28 = vector.multi_reduction <add>, %27, %cst_15 [1] : vector<16x128xf32> to vector<16xf32>
      %29 = vector.shape_cast %28 : vector<16xf32> to vector<16x1xf32>
      %30 = arith.addf %24, %29 : vector<16x1xf32>
      %c0_16 = arith.constant 0 : index
      %c0_17 = arith.constant 0 : index
      %31 = vector.load %arg8[%c0_16, %c0_17] : memref<16x1xf32, #tpu.memory_space<vmem>>, vector<16x1xf32>
      tpu.vector_store %arg8[%c0_16, %c0_17], %30 {strides = array<i32>} : memref<16x1xf32, #tpu.memory_space<vmem>>, vector<16x1xf32>,
      %c0_18 = arith.constant 0 : index
      %c0_19 = arith.constant 0 : index
      %32 = vector.load %arg7[%c0_18, %c0_19] : memref<16x1xf32, #tpu.memory_space<vmem>>, vector<16x1xf32>
      tpu.vector_store %arg7[%c0_18, %c0_19], %20 {strides = array<i32>} : memref<16x1xf32, #tpu.memory_space<vmem>>, vector<16x1xf32>,
    } else {
    }
    %c1_i32 = arith.constant 1 : i32
    %14 = arith.cmpi eq, %arg1, %c1_i32 : i32
    %15 = arith.extui %14 : i1 to i32
    %c0_i32_9 = arith.constant 0 : i32
    %16 = arith.cmpi ne, %15, %c0_i32_9 : i32
    scf.if %16 {
      %c0_10 = arith.constant 0 : index
      %c0_11 = arith.constant 0 : index
      %17 = vector.load %arg7[%c0_10, %c0_11] : memref<16x1xf32, #tpu.memory_space<vmem>>, vector<16x1xf32>
      %18 = vector.broadcast %17 : vector<16x1xf32> to vector<16x128xf32>
      %19 = arith.subf %5, %18 : vector<16x128xf32>
      %20 = math.exp %19 : vector<16x128xf32>
      %c0_12 = arith.constant 0 : index
      %c0_13 = arith.constant 0 : index
      %21 = vector.load %arg8[%c0_12, %c0_13] : memref<16x1xf32, #tpu.memory_space<vmem>>, vector<16x1xf32>
      %22 = tpu.reciprocal %21 {approx = true} : vector<16x1xf32> -> vector<16x1xf32>
      %23 = vector.broadcast %22 : vector<16x1xf32> to vector<16x128xf32>
      %24 = arith.mulf %20, %23 : vector<16x128xf32>
      %c0_14 = arith.constant 0 : index
      %c0_15 = arith.constant 0 : index
      %25 = vector.load %arg6[%c0_14, %c0_15] : memref<16x128xf32, #tpu.memory_space<vmem>>, vector<16x128xf32>
      tpu.vector_store %arg6[%c0_14, %c0_15], %24 {strides = array<i32>} : memref<16x128xf32, #tpu.memory_space<vmem>>, vector<16x128xf32>,
    } else {
    }
    return
  }
  func.func @transform_0(%arg0: i32, %arg1: i32, %arg2: i32) -> (i32, i32) {
    %c0_i32 = arith.constant 0 : i32
    %c0_i32_0 = arith.constant 0 : i32
    return %arg0, %c0_i32 : i32, i32
  }
  func.func @transform_1(%arg0: i32, %arg1: i32, %arg2: i32) -> (i32, i32) {
    %c0_i32 = arith.constant 0 : i32
    %c0_i32_0 = arith.constant 0 : i32
    return %c0_i32, %arg2 : i32, i32
  }
  func.func @transform_2(%arg0: i32, %arg1: i32, %arg2: i32) -> (i32, i32) {
    %c0_i32 = arith.constant 0 : i32
    %c0_i32_0 = arith.constant 0 : i32
    return %c0_i32, %arg2 : i32, i32
  }
  func.func @transform_3(%arg0: i32, %arg1: i32, %arg2: i32) -> (i32, i32) {
    %0 = arith.muli %arg2, %arg1 : i32
    %c0_i32 = arith.constant 0 : i32
    return %arg0, %0 : i32, i32
  }
}

</mosaic_0001>

<bundles_post_ra>
// kernel: tpu_custom_call.1
= control target key start
LH: loop header
LB: loop body
LE: loop exit
PB: predicated region body
PF: predicated region fallthrough
CT: control target
= control target key end

     0   :  { %8 = vsyncpa [#allocation5], 0  ;;  %s865_s0 = inlined_call_operand.hbm [shape: bf16[16,32], index: 0, kind: input, shape index: {}]   ;;  %s866_s1 = inlined_call_operand.hbm [shape: bf16[32,128], index: 1, kind: input, shape index: {}]   ;;  %s867_s2 = inlined_call_operand.vmem [shape: f32[1,128], index: 2, kind: input, shape index: {}]   ;;  %s868_s3 = inlined_call_operand.hbm [shape: f32[16,128], index: 3, kind: output, shape index: {}]  }
   0x1   :  { %9 = vsyncpa [#allocation8], 0 }
   0x2   :  { %10 = vsyncpa [#allocation6], 0 }
   0x3   :  { %12 = vsyncpa [#allocation6 + $0x1], 0  ;;  %s776_s12 = smov 0   ;;  %s778_s13 = smov 0  }
   0x4   :  { %s780_s14 = smov 0  }
   0x5 LB: > { %s502_s15 = sadd.s32 4294967295, %s743_s14   ;;  %s503_s16 = sadd.s32 4294967294, %s743_s14   ;;  %s743_s14 = sphi %s780_s14, %s18_s14   ;;  %s739_s13 = sphi %s778_s13, %s872_s13   ;;  %s735_s12 = sphi %s776_s12, %s871_s12  }
   0x6   : > { %s33_s17 = sadd.s32 1, %s739_s13  ;;  %p504_p0 = scmp.ge.s32.totalorder %s743_s14, 1 }
   0x7   : > { %p35_p1 = scmp.ge.s32.totalorder %s33_s17, 2  ;;  %p150_p2 = scmp.lt.s32.totalorder %s743_s14, 3 }
   0x8   : > { %p798_p3 = scmp.eq.s32.totalorder %s502_s15, 0  ;;  %s164_s22 = sshll.u32 %s865_s0, 4  ;;  %s165_s22 = int_to_ptr.hbm [resolvable:$true] %s164_s22 }
   0x9   : > { %s874_s17 = smov (%p35_p1, %s33_s17), 0  ;;  %p804_p4 = pnand %p504_p0, %p150_p2 }
   0xa   : > { %s745_s23 = smov [#allocation4]   ;;  %s180_s27 = sshll.u32 %s866_s1, 4  ;;  %s181_s27 = int_to_ptr.hbm [resolvable:$true] %s180_s27 }
   0xb   : > { %p547_p5 = pneg %p804_p4  ;;  %s166_s24 = sshll.u32 %s745_s23, 4  ;;  %s167_s24 = int_to_ptr.vmem [resolvable:$true] %s166_s24 }
   0xc   : > { %s746_s28 = smov 64   ;;  %s747_s29 = smov 4  }
   0xd   : > { %p548_p6 = pnand %p798_p3, %p547_p5  ;;  %s748_s30 = smov [#allocation7]  }
   0xe   : > { %s182_s4 = sshll.u32 %s748_s30, 4  ;;  %204 = sbr.rel (%p804_p4) target bundleno = 693 (0x2b5), region = 32  ;;  %s183_s4 = int_to_ptr.vmem [resolvable:$true] %s182_s4 }
   0xf   : > { %550 = dma.hbm_to_vmem [thread:$0]  (!%p548_p6), %s165_s22, 128, %s167_s24, [#allocation5], %s746_s28, %s746_s28, %s747_s29  }
  0x10   : > { %553 = dma.hbm_to_vmem [thread:$0]  (!%p548_p6), %s181_s27, 256, %s183_s4, [#allocation8], %s746_s28, %s746_s28, %s747_s29  }
  0x13   : > { %722 = dma.done.wait (%p798_p3), [#allocation5], 128  }
  0x14   : > { %724 = vsyncadd (%p798_p3), [#allocation5], 4294967168 }
  0x15   : > { %726 = dma.done.wait (%p798_p3), [#allocation8], 256  }
  0x16   : > { %728 = vsyncadd (%p798_p3), [#allocation8], 4294967040  ;;  %v533_v0 = vld [vmem:[#allocation7 + $0x8] sm:$0xff]  ;;  %v532_v1 = vld [vmem:[#allocation7] sm:$0xff]  ;;  %vm266_vm0 = vcmask 261120   ;;  %p284_p7 = scmp.eq.s32.totalorder %s735_s12, 0 }
  0x17   : > { %276 = vmatpush.bf16.msra.mxu0 %v533_v0  ;;  %v531_v2 = vld [vmem:[#allocation4] sm:$0xff]  ;;  %vm290_vm1 = vcmask (%p284_p7), 7168   ;;  %v749_v8 = vmov (%p284_p7), -inf   ;;  %v750_v9 = vmov (%p284_p7), 0.0  }
  0x18   : > { %v600_v3 = vld [vmem:[%s867_s2] ss:$0 sm:$0xff]  ;;  %291 = vst.msk [vmem:[#allocation2] sm:$0xff] (%p284_p7), %vm290_vm1, %v749_v8 }
  0x19   : > { %292 = vst.msk [vmem:[#allocation2 + $0x8] sm:$0xff] (%p284_p7), %vm290_vm1, %v749_v8 }
  0x1a   : > { %293 = vst.msk [vmem:[#allocation3] sm:$0xff] (%p284_p7), %vm290_vm1, %v750_v9 }
  0x1b   : > { %277 = vmatpush.bf16.msra.mxu0 %v532_v1  ;;  %294 = vst.msk [vmem:[#allocation3 + $0x8] sm:$0xff] (%p284_p7), %vm290_vm1, %v750_v9 }
  0x1e   : > { %523 = vmatmul.msk.bf16.vlgmr.msra.gmra.mxu0 %vm266_vm0, %v531_v2 }
  0x9b   : > { %v279_v4 = vpop.f32.mrf.mxu0 }
  0x9c   : > { %v832_v5 = vadd.f32 %v600_v3, %v279_v4 }
  0xa0   : > { %289 = sbr.rel (!%p284_p7) target bundleno = 165 (0xa5), region = 44 }
  0xa3   : > { %v281_v6 = vpop.f32.mrf.mxu0 }
  0xa4   : > { %v834_v7 = vadd.f32 %v600_v3, %v281_v6 }
  0xa5 PF: > { %p525_p8 = scmp.ne.s32.totalorder %s735_s12, 0 }
  0xa7   : > { %297 = sbr.rel (%p525_p8) target bundleno = 543 (0x21f), region = 48 }
  0xac   : > { %300 = vmax.xlane.f32.xlu0 %v832_v5  ;;  %v751_v10 = vmov 0   ;;  %v298_v11 = vld [vmem:[#allocation2] sm:$0xff]  ;;  %vm338_vm2 = vcmask 7168   ;;  %v299_v15 = vld [vmem:[#allocation2 + $0x8] sm:$0xff]  ;;  %v306_v30 = vld [vmem:[#allocation3] sm:$0xff] }
  0xad   : > { %601 = vset.pattern.permute.xlu1 %v751_v10  ;;  %602 = vset.pattern.permute.xlu0 %v751_v10  ;;  %v307_v35 = vld [vmem:[#allocation3 + $0x8] sm:$0xff] }
  0xb4   : > { %302 = vmax.xlane.f32.xlu0 %v834_v7 }
 0x11f   : > { %v301_v12 = vpop.xlane.xlu0 %300 }
 0x120   : > { %v304_v13 = vmax.f32 %v298_v11, %v301_v12 }
 0x122   : > { %v308_v14 = vsub.f32 %v298_v11, %v304_v13  ;;  %341 = vst.msk [vmem:[#allocation2] sm:$0xff] %vm338_vm2, %v304_v13  ;;  %318 = vperm.xlu1 %601, %v304_v13  }
 0x124   : > { %v310_v27 = vmul.f32 1.442695, %v308_v14 }
 0x127   : > { %v303_v16 = vpop.xlane.xlu0 %302 }
 0x128   : > { %v305_v17 = vmax.f32 %v299_v15, %v303_v16 }
 0x12a   : > { %v309_v18 = vsub.f32 %v299_v15, %v305_v17  ;;  %342 = vst.msk [vmem:[#allocation2 + $0x8] sm:$0xff] %vm338_vm2, %v305_v17  ;;  %323 = vperm.xlu1 %601, %v305_v17  }
 0x12c   : > { %v312_v28 = vmul.f32 1.442695, %v309_v18 }
 0x194   : > { %v319_v19 = vpop.permute.xlu1 %318 }
 0x195   : > { %v326_v20 = vsub.f32 %v832_v5, %v319_v19 }
 0x197   : > { %v328_v21 = vmul.f32 1.442695, %v326_v20 }
 0x199   : > { %603 = vpow2.f32 %v328_v21 }
 0x19c   : > { %v324_v22 = vpop.permute.xlu1 %323 }
 0x19d   : > { %v327_v23 = vsub.f32 %v834_v7, %v324_v22 }
 0x19f   : > { %v604_v24 = vpop.eup %603  ;;  %v330_v25 = vmul.f32 1.442695, %v327_v23 }
 0x1a0   : > { %332 = vadd.xlane.f32.xlu2 %v604_v24 }
 0x1a1   : > { %605 = vpow2.f32 %v330_v25 }
 0x1a2   : > { %607 = vpow2.f32 %v310_v27 }
 0x1a3   : > { %609 = vpow2.f32 %v312_v28 }
 0x1a7   : > { %v606_v26 = vpop.eup %605 }
 0x1a8   : > { %334 = vadd.xlane.f32.xlu2 %v606_v26  ;;  %v608_v29 = vpop.eup %607 }
 0x1a9   : > { %v314_v31 = vmul.f32 %v608_v29, %v306_v30  ;;  %v610_v34 = vpop.eup %609 }
 0x1aa   : > { %v315_v36 = vmul.f32 %v610_v34, %v307_v35 }
 0x213   : > { %v333_v32 = vpop.xlane.xlu2 %332 }
 0x214   : > { %v336_v33 = vadd.f32 %v333_v32, %v314_v31 }
 0x216   : > { %339 = vst.msk [vmem:[#allocation3] sm:$0xff] %vm338_vm2, %v336_v33 }
 0x21b   : > { %v335_v37 = vpop.xlane.xlu2 %334 }
 0x21c   : > { %v337_v38 = vadd.f32 %v335_v37, %v315_v36 }
 0x21e   : > { %340 = vst.msk [vmem:[#allocation3 + $0x8] sm:$0xff] %vm338_vm2, %v337_v38 }
 0x21f PF: > { %p526_p9 = scmp.ne.s32.totalorder %s735_s12, 1 }
 0x221   : > { %346 = sbr.rel (%p526_p9) target bundleno = 689 (0x2b1), region = 52 }
 0x226   : > { %v347_v39 = vld [vmem:[#allocation2] sm:$0xff]  ;;  %v365_v40 = vld [vmem:[#allocation3] sm:$0xff]  ;;  %v752_v41 = vmov 0   ;;  %v366_v42 = vld [vmem:[#allocation3 + $0x8] sm:$0xff] }
 0x227   : > { %611 = vset.pattern.permute.xlu0 %v752_v41  ;;  %612 = vset.pattern.permute.xlu1 %v752_v41  ;;  %613 = vrcp.f32 %v365_v40  ;;  %v348_v44 = vld [vmem:[#allocation2 + $0x8] sm:$0xff] }
 0x228   : > { %351 = vperm.xlu0 %611, %v347_v39   ;;  %615 = vrcp.f32 %v366_v42 }
 0x22d   : > { %v614_v43 = vpop.eup %613 }
 0x22e   : > { %371 = vperm.xlu1 %612, %v614_v43   ;;  %v616_v45 = vpop.eup %615 }
 0x230   : > { %356 = vperm.xlu0 %611, %v348_v44  }
 0x236   : > { %376 = vperm.xlu1 %612, %v616_v45  }
 0x29a   : > { %v352_v46 = vpop.permute.xlu0 %351 }
 0x29b   : > { %v359_v47 = vsub.f32 %v832_v5, %v352_v46 }
 0x29d   : > { %v361_v48 = vmul.f32 1.442695, %v359_v47 }
 0x29f   : > { %617 = vpow2.f32 %v361_v48 }
 0x2a0   : > { %v372_v50 = vpop.permute.xlu1 %371 }
 0x2a2   : > { %v357_v49 = vpop.permute.xlu0 %356 }
 0x2a3   : > { %v360_v51 = vsub.f32 %v834_v7, %v357_v49 }
 0x2a5   : > { %v618_v52 = vpop.eup %617  ;;  %v363_v53 = vmul.f32 1.442695, %v360_v51 }
 0x2a6   : > { %v379_v54 = vmul.f32 %v618_v52, %v372_v50 }
 0x2a7   : > { %619 = vpow2.f32 %v363_v53 }
 0x2a8   : > { %381 = vst [vmem:[#allocation9] sm:$0xff] %v379_v54  ;;  %v377_v56 = vpop.permute.xlu1 %376 }
 0x2ad   : > { %v620_v55 = vpop.eup %619 }
 0x2ae   : > { %v380_v57 = vmul.f32 %v620_v55, %v377_v56 }
 0x2b0   : > { %382 = vst [vmem:[#allocation9 + $0x8] sm:$0xff] %v380_v57 }
 0x2b1 PF: > { %p562_p10 = scmp.eq.s32.totalorder %s502_s15, 1  ;;  %s400_s9 = sshll.u32 %s868_s3, 4  ;;  %s401_s9 = int_to_ptr.hbm [resolvable:$true] %s400_s9 }
 0x2b2   : > { %s753_s10 = smov [#allocation9]   ;;  %s754_s12 = smov 128  }
 0x2b3   : > { %s398_s11 = sshll.u32 %s753_s10, 4  ;;  %s755_s18 = smov 8   ;;  %s399_s11 = int_to_ptr.vmem [resolvable:$true] %s398_s11 }
 0x2b4   : > { %544 = dma.vmem_to_hbm [thread:$0]  (%p562_p10), %s399_s11, 256, %s401_s9, [#allocation6], %s754_s12, %s754_s12, %s755_s18  }
 0x2b5 PF: > { %p563_p11 = scmp.ge.s32.totalorder %s743_s14, 2  ;;  %p564_p12 = scmp.eq.s32.totalorder %s503_s16, 1 }
 0x2b7   : > { %p555_p13 = pnand %p564_p12, %p563_p11 }
 0x2b9   : > { %p556_p0 = pneg %p555_p13 }
 0x2bb   : > { %730 = dma.done.wait (%p556_p0), [#allocation6], 256  }
 0x2bc   : > { %732 = vsyncadd (%p556_p0), [#allocation6], 4294967040  ;;  %s18_s14 = sadd.s32 1, %s743_s14   ;;  %s871_s12 = smov %s739_s13 }
 0x2bd   : > { %p15_p1 = scmp.ge.s32.totalorder %s18_s14, 4   ;;  %s872_s13 = smov %s874_s17 }
 0x2bf   :  { %17 = sbr.rel (!%p15_p1) target bundleno = 5 (0x5), region = 90 }
 0x2c4   :  { %422 = vsyncpa [#allocation5], 1 }
 0x2c5   :  { %424 = vsyncpa [#allocation5 + $0x1], 1 }
 0x2c6   :  { %425 = vsyncpa [#allocation8], 1 }
 0x2c7   :  { %426 = vsyncpa [#allocation6], 1 }
 0x2c8   :  { %428 = vsyncpa [#allocation6 + $0x1], 1 }

</bundles_post_ra>
